<compile_context>
chip_gen: v7x
topology: tpu7x:2x2x1
jax: 0.10.0
libtpu: 0.0.40
codegen_flags: <defaults>
</compile_context>

<pallas_src>
import jax
import jax.numpy as jnp
from jax import lax
from jax.experimental import pallas as pl
from jax.experimental.pallas import tpu as pltpu


def _make_image_da_kernel(hidden: int, hidden_chunk: int):
    assert hidden % hidden_chunk == 0
    n_chunks = hidden // hidden_chunk

    def kernel(x_ref, w1_ref, w2_ref, o_ref):
        # x_ref : (1, C, TM)        f32 VMEM — one batch element, one spatial tile (channel-major)
        # w1_ref: (hidden, C)       bf16 VMEM — resident across the whole grid
        # w2_ref: (out_ch, hidden)  bf16 VMEM — resident across the whole grid
        # o_ref : (1, out_ch, TM)   f32 VMEM — lane-dense output tile (doubles as the accumulator)
        x = x_ref[0].astype(jnp.bfloat16)                      # (C, TM), cast once per tile
        for c in range(n_chunks):                              # static, small trip count
            lo = c * hidden_chunk
            w1c = w1_ref[lo:lo + hidden_chunk, :]              # (HC, C)   bf16, static slice
            # (HC, TM) = W1[chunk] @ X, f32 accumulation on the MXU.
            h = jnp.dot(w1c, x, preferred_element_type=jnp.float32)
            h = jnp.maximum(h, 0.0).astype(jnp.bfloat16)       # ReLU, then bf16 for the 2nd MXU pass
            w2c = w2_ref[:, lo:lo + hidden_chunk]              # (out_ch, HC) bf16, static slice
            part = jnp.dot(w2c, h, preferred_element_type=jnp.float32)   # (out_ch, TM)
            if c == 0:
                o_ref[0] = part
            else:
                o_ref[0] = o_ref[0] + part

    return kernel


def image_da_forward(x_nchw, w1, w2, *, tm=4096, hidden_chunk=256):
    """_ImageDA forward (1x1 conv -> ReLU -> 1x1 conv), NCHW in / NCHW out.

    x_nchw: (N, C, H, W) float32
    w1    : (512, C)  -- PyTorch Conv1.weight with the trailing 1x1 kernel dims squeezed
    w2    : (2, 512)  -- PyTorch Conv2.weight squeezed
    returns (N, 2, H, W) float32
    """
    N, C, H, W = x_nchw.shape
    hidden = w1.shape[0]          # 512
    out_ch = w2.shape[0]          # 2
    HW = H * W

    # Channel-major view: a free reshape, no transpose pass through HBM.
    x = x_nchw.reshape(N, C, HW)

    # Pre-cast weights to bf16 on the host: halves the resident VMEM weight buffers and
    # removes per-chunk casts inside the kernel. Accumulation stays in f32.
    w1_bf = w1.astype(jnp.bfloat16)
    w2_bf = w2.astype(jnp.bfloat16)

    # Hidden-chunk size: must divide hidden; keeps the live (HC, TM) intermediate small.
    hc = min(hidden_chunk, hidden)
    while hidden % hc != 0:
        hc //= 2
    hc = max(hc, 1)

    # Spatial tile: clamp to the 128-rounded spatial extent. Partial last blocks are handled by
    # Pallas (masked writeback); each output column only depends on its own input column, so the
    # garbage columns of a partial block are harmless.
    hw_pad = ((HW + 127) // 128) * 128
    tm_eff = min(tm, hw_pad)
    # v7x has 2 TensorCores: make sure a single-batch problem still yields >= 2 grid steps.
    if N == 1 and tm_eff >= hw_pad and hw_pad >= 256:
        tm_eff = max(128, ((hw_pad // 2 + 127) // 128) * 128)
    grid = (N, pl.cdiv(HW, tm_eff))

    flops = 2 * N * HW * (C * hidden + hidden * out_ch)
    bytes_accessed = (4 * (N * C * HW + N * out_ch * HW)      # f32 activations in / out
                      + 2 * (hidden * C + out_ch * hidden))   # bf16 weights

    out = pl.pallas_call(
        _make_image_da_kernel(hidden, hc),
        out_shape=jax.ShapeDtypeStruct((N, out_ch, HW), jnp.float32),
        grid_spec=pltpu.PrefetchScalarGridSpec(
            num_scalar_prefetch=0,
            grid=grid,
            in_specs=[
                pl.BlockSpec((1, C, tm_eff), lambda n, j: (n, 0, j)),        # X tile
                pl.BlockSpec((hidden, C), lambda n, j: (0, 0)),              # W1 (resident)
                pl.BlockSpec((out_ch, hidden), lambda n, j: (0, 0)),         # W2 (resident)
            ],
            out_specs=pl.BlockSpec((1, out_ch, tm_eff), lambda n, j: (n, 0, j)),
        ),
        compiler_params=pltpu.CompilerParams(
            dimension_semantics=("parallel", "parallel")),
        cost_estimate=pl.CostEstimate(
            flops=flops, transcendentals=0, bytes_accessed=bytes_accessed),
    )(x, w1_bf, w2_bf)

    # (N, 2, H*W) -> (N, 2, H, W): contiguous reshape, free.
    return out.reshape(N, out_ch, H, W)


def feh_classifier_forward(x, w1, w2, *, tm=4096, hidden_chunk=256):
    """Translatable part of FEHclassifier.forward: GRL (identity fwd) -> _ImageDA.
    Returns (output, input) like the PyTorch module.
    TODO(synk): the intermediate YOLOv5 Conv(ch,16,3,1)/Conv(16,1,3,1) blocks are external
    to the spec and omitted here.
    """
    # GradientReverseFunction.forward is the identity — no `x * 1.0` pass through HBM.
    out = image_da_forward(x, w1, w2, tm=tm, hidden_chunk=hidden_chunk)
    return out, x


def _reference(x_nchw, w1, w2):
    # Pure-JAX f32 reference of the PyTorch _ImageDA forward (1x1 convs == channel einsum).
    h = jnp.einsum("nchw,oc->nohw", x_nchw, w1)
    h = jnp.maximum(h, 0.0)
    return jnp.einsum("nchw,oc->nohw", h, w2)


if __name__ == "__main__":
    key = jax.random.PRNGKey(0)
    k_x, k_w1, k_w2 = jax.random.split(key, 3)

    N, dim, H, W = 2, 4, 16, 16
    hidden, out_ch = 512, 2

    x = jax.random.normal(k_x, (N, dim, H, W), dtype=jnp.float32)
    # Deterministic synthetic weights (Conv2d(..., kernel_size=1, bias=False) shapes,
    # with the trailing 1x1 kernel dims squeezed).
    w1 = jax.random.normal(k_w1, (hidden, dim), dtype=jnp.float32) * (1.0 / float(dim) ** 0.5)
    w2 = jax.random.normal(k_w2, (out_ch, hidden), dtype=jnp.float32) * (1.0 / float(hidden) ** 0.5)

    out, passthrough = feh_classifier_forward(x, w1, w2)
    out = jax.block_until_ready(out)

    ref = _reference(x, w1, w2)
    assert out.shape == (N, out_ch, H, W), out.shape
    assert passthrough.shape == x.shape
    # bf16 MXU inputs with f32 accumulation -> tolerance loosened vs the pure-f32 reference.
    max_err = float(jnp.max(jnp.abs(out - ref)))
    assert jnp.allclose(out, ref, atol=1e-1, rtol=5e-2), max_err
    assert bool(jnp.all(passthrough == x))

    print("KERNEL_OK")
</pallas_src>

<mosaic_0001>
module attributes {stable_mosaic.version = 11 : i64} {
  func.func @kernel(%arg0: i32, %arg1: i32, %arg2: memref<1x4x256xf32, #tpu.memory_space<vmem>>, %arg3: memref<512x4xbf16, #tpu.memory_space<vmem>>, %arg4: memref<2x512xbf16, #tpu.memory_space<vmem>>, %arg5: memref<1x2x256xf32, #tpu.memory_space<vmem>>) attributes {dimension_semantics = [#tpu.dimension_semantics<parallel>, #tpu.dimension_semantics<parallel>], iteration_bounds = array<i64: 2, 1>, scalar_prefetch = 0 : i64, scratch_operands = 0 : i64, tpu.core_type = #tpu.core_type<tc>, window_params = [{transform_indices = @transform_0, window_bounds = array<i64: 1, 4, 256>}, {pipeline_mode = #tpu.pipeline_mode<synchronous>, transform_indices = @transform_1, window_bounds = array<i64: 512, 4>}, {pipeline_mode = #tpu.pipeline_mode<synchronous>, transform_indices = @transform_2, window_bounds = array<i64: 2, 512>}, {transform_indices = @transform_3, window_bounds = array<i64: 1, 2, 256>}]} {
    %c0 = arith.constant 0 : index
    %c0_0 = arith.constant 0 : index
    %c0_1 = arith.constant 0 : index
    %0 = vector.load %arg2[%c0, %c0_0, %c0_1] : memref<1x4x256xf32, #tpu.memory_space<vmem>>, vector<1x4x256xf32>
    %1 = vector.shape_cast %0 : vector<1x4x256xf32> to vector<4x256xf32>
    %2 = arith.truncf %1 : vector<4x256xf32> to vector<4x256xbf16>
    %c0_2 = arith.constant 0 : index
    %c0_3 = arith.constant 0 : index
    %3 = vector.load %arg3[%c0_2, %c0_3] : memref<512x4xbf16, #tpu.memory_space<vmem>>, vector<256x4xbf16>
    %cst = arith.constant dense<0.000000e+00> : vector<256x256xf32>
    %4 = tpu.matmul %3, %2, %cst {dimension_numbers = #tpu.dot_dimension_numbers<[1], [0], [0], [1], [0, 0, 1, 1], [], []>} : vector<256x4xbf16>, vector<4x256xbf16>, vector<256x256xf32> -> vector<256x256xf32>
    %cst_4 = arith.constant 0.000000e+00 : f32
    %5 = vector.broadcast %cst_4 : f32 to vector<256x256xf32>
    %6 = arith.maximumf %4, %5 : vector<256x256xf32>
    %7 = arith.truncf %6 : vector<256x256xf32> to vector<256x256xbf16>
    %c0_5 = arith.constant 0 : index
    %c0_6 = arith.constant 0 : index
    %8 = vector.load %arg4[%c0_5, %c0_6] : memref<2x512xbf16, #tpu.memory_space<vmem>>, vector<2x256xbf16>
    %cst_7 = arith.constant dense<0.000000e+00> : vector<2x256xf32>
    %9 = tpu.matmul %8, %7, %cst_7 {dimension_numbers = #tpu.dot_dimension_numbers<[1], [0], [0], [1], [0, 0, 1, 1], [], []>} : vector<2x256xbf16>, vector<256x256xbf16>, vector<2x256xf32> -> vector<2x256xf32>
    %c0_8 = arith.constant 0 : index
    %c0_9 = arith.constant 0 : index
    %c0_10 = arith.constant 0 : index
    %10 = vector.load %arg5[%c0_8, %c0_9, %c0_10] : memref<1x2x256xf32, #tpu.memory_space<vmem>>, vector<1x2x256xf32>
    %11 = vector.shape_cast %10 : vector<1x2x256xf32> to vector<2x256xf32>
    %12 = vector.shape_cast %9 : vector<2x256xf32> to vector<1x2x256xf32>
    tpu.vector_store %arg5[%c0_8, %c0_9, %c0_10], %12 {strides = array<i32>} : memref<1x2x256xf32, #tpu.memory_space<vmem>>, vector<1x2x256xf32>,
    %c256 = arith.constant 256 : index
    %c0_11 = arith.constant 0 : index
    %13 = vector.load %arg3[%c256, %c0_11] : memref<512x4xbf16, #tpu.memory_space<vmem>>, vector<256x4xbf16>
    %cst_12 = arith.constant dense<0.000000e+00> : vector<256x256xf32>
    %14 = tpu.matmul %13, %2, %cst_12 {dimension_numbers = #tpu.dot_dimension_numbers<[1], [0], [0], [1], [0, 0, 1, 1], [], []>} : vector<256x4xbf16>, vector<4x256xbf16>, vector<256x256xf32> -> vector<256x256xf32>
    %cst_13 = arith.constant 0.000000e+00 : f32
    %15 = vector.broadcast %cst_13 : f32 to vector<256x256xf32>
    %16 = arith.maximumf %14, %15 : vector<256x256xf32>
    %17 = arith.truncf %16 : vector<256x256xf32> to vector<256x256xbf16>
    %c0_14 = arith.constant 0 : index
    %c256_15 = arith.constant 256 : index
    %18 = vector.load %arg4[%c0_14, %c256_15] : memref<2x512xbf16, #tpu.memory_space<vmem>>, vector<2x256xbf16>
    %cst_16 = arith.constant dense<0.000000e+00> : vector<2x256xf32>
    %19 = tpu.matmul %18, %17, %cst_16 {dimension_numbers = #tpu.dot_dimension_numbers<[1], [0], [0], [1], [0, 0, 1, 1], [], []>} : vector<2x256xbf16>, vector<256x256xbf16>, vector<2x256xf32> -> vector<2x256xf32>
    %c0_17 = arith.constant 0 : index
    %c0_18 = arith.constant 0 : index
    %c0_19 = arith.constant 0 : index
    %20 = vector.load %arg5[%c0_17, %c0_18, %c0_19] : memref<1x2x256xf32, #tpu.memory_space<vmem>>, vector<1x2x256xf32>
    %21 = vector.shape_cast %20 : vector<1x2x256xf32> to vector<2x256xf32>
    %22 = arith.addf %21, %19 : vector<2x256xf32>
    %c0_20 = arith.constant 0 : index
    %c0_21 = arith.constant 0 : index
    %c0_22 = arith.constant 0 : index
    %23 = vector.load %arg5[%c0_20, %c0_21, %c0_22] : memref<1x2x256xf32, #tpu.memory_space<vmem>>, vector<1x2x256xf32>
    %24 = vector.shape_cast %23 : vector<1x2x256xf32> to vector<2x256xf32>
    %25 = vector.shape_cast %22 : vector<2x256xf32> to vector<1x2x256xf32>
    tpu.vector_store %arg5[%c0_20, %c0_21, %c0_22], %25 {strides = array<i32>} : memref<1x2x256xf32, #tpu.memory_space<vmem>>, vector<1x2x256xf32>,
    return
  }
  func.func @transform_0(%arg0: i32, %arg1: i32) -> (i32, i32, i32) {
    %c0_i32 = arith.constant 0 : i32
    %c0_i32_0 = arith.constant 0 : i32
    return %arg0, %c0_i32, %arg1 : i32, i32, i32
  }
  func.func @transform_1(%arg0: i32, %arg1: i32) -> (i32, i32) {
    %c0_i32 = arith.constant 0 : i32
    %c0_i32_0 = arith.constant 0 : i32
    %c0_i32_1 = arith.constant 0 : i32
    return %c0_i32, %c0_i32_0 : i32, i32
  }
  func.func @transform_2(%arg0: i32, %arg1: i32) -> (i32, i32) {
    %c0_i32 = arith.constant 0 : i32
    %c0_i32_0 = arith.constant 0 : i32
    %c0_i32_1 = arith.constant 0 : i32
    return %c0_i32, %c0_i32_0 : i32, i32
  }
  func.func @transform_3(%arg0: i32, %arg1: i32) -> (i32, i32, i32) {
    %c0_i32 = arith.constant 0 : i32
    %c0_i32_0 = arith.constant 0 : i32
    return %arg0, %c0_i32, %arg1 : i32, i32, i32
  }
}

</mosaic_0001>

<bundles_post_ra>
// kernel: tpu_custom_call.1
= control target key start
LH: loop header
LB: loop body
LE: loop exit
PB: predicated region body
PF: predicated region fallthrough
CT: control target
= control target key end

     0   :  { %8 = vsyncpa [#allocation3], 0  ;;  %s1964_s0 = inlined_call_operand.vmem [shape: f32[2,4,256], index: 0, kind: input, shape index: {}]   ;;  %s1965_s1 = inlined_call_operand.vmem [shape: bf16[512,4], index: 1, kind: input, shape index: {}]   ;;  %s1966_s2 = inlined_call_operand.vmem [shape: bf16[2,512], index: 2, kind: input, shape index: {}]   ;;  %s1967_s3 = inlined_call_operand.hbm [shape: f32[2,2,256], index: 3, kind: output, shape index: {}]  }
   0x1   :  { %10 = vsyncpa [#allocation3 + $0x1], 0  ;;  %s1645_s12 = smov 0   ;;  %s1647_s13 = smov 0  }
   0x2   :  { %s1649_s14 = smov 0   ;;  %s1651_s15 = smov 0  }
   0x3   :  { %s1653_s16 = smov 0   ;;  %s1655_s17 = smov 0  }
   0x4 LB: > { %s1366_s18 = sadd.s32 4294967295, %s1619_s17   ;;  %s1367_s19 = sadd.s32 4294967294, %s1619_s17   ;;  %s1619_s17 = sphi %s1655_s17, %s16_s17   ;;  %s1615_s16 = sphi %s1653_s16, %s1974_s16   ;;  %s1611_s15 = sphi %s1651_s15, %s1973_s15   ;;  %s1607_s14 = sphi %s1649_s14, %s1972_s14   ;;  %s1603_s13 = sphi %s1647_s13, %s1971_s13   ;;  %s1599_s12 = sphi %s1645_s12, %s1970_s12  }
   0x5   : > { %s28_s20 = sadd.s32 1, %s1615_s16  ;;  %s107_s21 = sadd.s32 1, %s1607_s14 }
   0x6   : > { %p30_p0 = scmp.ge.s32.totalorder %s28_s20, 2  ;;  %p117_p1 = scmp.ne.s32.totalorder %s1607_s14, %s1603_s13 }
   0x7   : > { %p118_p2 = scmp.eq.s32.totalorder %s1366_s18, 1  ;;  %p123_p3 = scmp.ne.s32.totalorder %s1603_s13, %s1599_s12 }
   0x8   : > { %s1976_s20 = smov (%p30_p0, %s28_s20), 0  ;;  %p124_p5 = scmp.eq.s32.totalorder %s1367_s19, 1 }
   0x9   : > { %p1685_p4 = por %p118_p2, %p117_p1  ;;  %s102_s23 = ssub.s32 %s1615_s16, %s1976_s20 }
   0xa   : > { %p1370_p6 = scmp.ge.s32.totalorder %s1619_s17, 1  ;;  %p105_p7 = scmp.eq.s32.totalorder %s102_s23, 0 }
   0xb   : > { %p1692_p8 = por %p124_p5, %p123_p3  ;;  %p161_p9 = scmp.lt.s32.totalorder %s1619_s17, 3 }
   0xc   : > { %s1698_s25 = scalar_select %p105_p7, %s1607_s14, %s107_s21  }
   0xd   : > { %p162_p10 = pnand %p1370_p6, %p161_p9 }
   0xe   : > { %p190_p11 = scmp.lt.s32.totalorder (!%p162_p10), %s1611_s15, 1  ;;  %v1621_v0 = vmov (!%p162_p10), 0   ;;  %vm368_vm0 = vcmask (!%p162_p10), 1041408   ;;  %v1509_v6 = vld [vmem:[%s1965_s1] sm:$0xff] (!%p162_p10)   ;;  %vm319_vm1 = vcmask (!%p162_p10), 31744   ;;  %v1510_v7 = vld [vmem:[%s1965_s1 + $0x8] sm:$0xff] (!%p162_p10)   ;;  %v677_v24 = vlaneseq (!%p162_p10) }
   0xf   : > { %165 = sbr.rel (%p162_p10) target bundleno = 962 (0x3c2), region = 32  ;;  %407 = vmatprep.mubr.bf16.mxu0 (!%p162_p10), %v1621_v0  ;;  %v1511_v8 = vld [vmem:[%s1965_s1 + $0x10] sm:$0xff] (!%p162_p10)   ;;  %v1512_v9 = vld [vmem:[%s1965_s1 + $0x18] sm:$0xff] (!%p162_p10)   ;;  %v1513_v10 = vld [vmem:[%s1965_s1 + $0x20] sm:$0xff] (!%p162_p10)   ;;  %v1622_v22 = vmov (!%p162_p10), 1966171168  }
  0x10   : > { %v1514_v11 = vld [vmem:[%s1965_s1 + $0x28] sm:$0xff] (!%p162_p10)   ;;  %v1515_v12 = vld [vmem:[%s1965_s1 + $0x30] sm:$0xff] (!%p162_p10)   ;;  %v1516_v13 = vld [vmem:[%s1965_s1 + $0x38] sm:$0xff] (!%p162_p10)   ;;  %v675_v23 = vunpack.c.l.s4 (!%p162_p10), %v1622_v22  ;;  %v1793_v26 = vshrl.u32 (!%p162_p10), %v677_v24, 7  ;;  %s186_s29 = sand.u32 (!%p162_p10), 1, %s1603_s13   ;;  %s1449_s7 = sshll.u32 (!%p162_p10), %s1611_s15, 6 }
  0x11   : > { %v1517_v14 = vld [vmem:[%s1965_s1 + $0x40] sm:$0xff] (!%p162_p10)   ;;  %v1518_v15 = vld [vmem:[%s1965_s1 + $0x48] sm:$0xff] (!%p162_p10)   ;;  %v1519_v16 = vld [vmem:[%s1965_s1 + $0x50] sm:$0xff] (!%p162_p10)   ;;  %s1914_s11 = scalar_lea.hbm (!%p162_p10), %s1967_s3, %s1449_s7  ;;  %s1274_s18 = scalar_lea.sflag (!%p162_p10), [#allocation3], %s186_s29 }
  0x12   : > { %v1520_v17 = vld [vmem:[%s1965_s1 + $0x58] sm:$0xff] (!%p162_p10)   ;;  %v1521_v18 = vld [vmem:[%s1965_s1 + $0x60] sm:$0xff] (!%p162_p10)   ;;  %v1522_v19 = vld [vmem:[%s1965_s1 + $0x68] sm:$0xff] (!%p162_p10)   ;;  %v676_v25 = vunpack.c.0.s8 (!%p162_p10), %v675_v23 }
  0x13   : > { %v1523_v20 = vld [vmem:[%s1965_s1 + $0x70] sm:$0xff] (!%p162_p10)   ;;  %v1524_v21 = vld [vmem:[%s1965_s1 + $0x78] sm:$0xff] (!%p162_p10)   ;;  %v1798_v27 = vld.sshfl [vmem:[%s1966_s2] sm:$0x11 pattern:$0x75316420] (!%p162_p10) }
  0x14   : > { %v673_v28 = vcombine.high (!%p162_p10), %v1798_v27, %v1798_v27  ;;  %v1803_v29 = vsub.s32 (!%p162_p10), %v676_v25, %v1793_v26 }
  0x16   : > { %s191_s26 = scalar_select %p190_p11, %s1611_s15, 1  ;;  %v687_v32 = vrot.slane %v673_v28, %v1803_v29 }
  0x17   : > { %s1624_s15 = smov [#allocation2]  }
  0x18   : > { %s1448_s27 = sshll.u32 %s191_s26, 3  ;;  %722 = vmatprep.mubr.bf16.mxu1 %v687_v32  ;;  %s1545_s21 = sshll.u32 %s1624_s15, 4  ;;  %s1546_s21 = int_to_ptr.vmem [resolvable:$false] %s1545_s21 }
  0x19   : > { %s197_s30 = scalar_lea.vmem %s1964_s0, %s1448_s27  ;;  %s1547_s23 = scalar_lea.vmem %s1546_s21, 128 }
  0x1a   : > { %v201_v1 = vld [vmem:[%s197_s30] sm:$0xff]  ;;  %s1371_s30 = sshll.u32 %s186_s29, 2 }
  0x1b   : > { %v203_v2 = vcombine.high %v201_v1, %v201_v1  ;;  %v205_v3 = vpack.c.bf16 %v201_v1, %v201_v1  ;;  %s1894_s4 = scalar_lea.vmem [#allocation2], %s1371_s30 }
  0x1c   : > { %s1290_s8 = sshll.u32 %s1894_s4, 4  ;;  %s1916_s8 = int_to_ptr.vmem [resolvable:$true] %s1290_s8 }
  0x1d   : > { %v1706_v4 = vpack.c.bf16 %v203_v2, %v203_v2  ;;  %v1709_v5 = vsel %vm368_vm0, %v205_v3, 0  ;;  %s1541_s19 = scalar_lea.vmem %s1916_s8, 64  ;;  %p1548_p1 = scmp.lt.s32.totalorder %s1916_s8, %s1546_s21 }
  0x1e   : > { %p1542_p12 = scmp.ne.s32.totalorder %s1916_s8, %s1541_s19  ;;  %p1549_p2 = scmp.lt.s32.totalorder %s1547_s23, %s1541_s19 }
  0x1f   : > { %1390 = vmatprep.subr.msk.bf16.mxu0 %vm368_vm0, %v1706_v4 }
  0x20   : > { %376 = vmatpush1.bf16.msra.mxu0 %v1709_v5  ;;  %p1543_p13 = pnand %p1542_p12, %p1685_p4  ;;  %p1550_p3 = por %p1549_p2, %p1548_p1 }
  0x22   : > { %p1544_p0 = pneg %p1543_p13 }
  0x23   : > { %1391 = vmatmul.mubr.msk.bf16.vlgmr.msra.gmra.mrb[0].mxu0 %vm319_vm1, %v1509_v6 }
  0x24   : > { %417 = vmatprep.mubr.bf16.mxu0 %v1621_v0  ;;  %p1551_p5 = pnand %p1550_p3, %p1544_p0 }
  0x2b   : > { %1392 = vmatmul.mubr.msk.bf16.gmra.mrb[4].mxu0 %vm319_vm1, %v1510_v7 }
  0x2c   : > { %427 = vmatprep.mubr.bf16.mxu0 %v1621_v0 }
  0x33   : > { %1393 = vmatmul.mubr.msk.bf16.gmra.mrb[8].mxu0 %vm319_vm1, %v1511_v8 }
  0x34   : > { %437 = vmatprep.mubr.bf16.mxu0 %v1621_v0 }
  0x3b   : > { %1394 = vmatmul.mubr.msk.bf16.gmra.mrb[12].mxu0 %vm319_vm1, %v1512_v9 }
  0x3c   : > { %447 = vmatprep.mubr.bf16.mxu0 %v1621_v0 }
  0x43   : > { %1395 = vmatmul.mubr.msk.bf16.gmra.mrb[16].mxu0 %vm319_vm1, %v1513_v10 }
  0x44   : > { %457 = vmatprep.mubr.bf16.mxu0 %v1621_v0 }
  0x4b   : > { %1396 = vmatmul.mubr.msk.bf16.gmra.mrb[20].mxu0 %vm319_vm1, %v1514_v11 }
  0x4c   : > { %467 = vmatprep.mubr.bf16.mxu0 %v1621_v0 }
  0x53   : > { %1397 = vmatmul.mubr.msk.bf16.gmra.mrb[24].mxu0 %vm319_vm1, %v1515_v12 }
  0x54   : > { %477 = vmatprep.mubr.bf16.mxu0 %v1621_v0 }
  0x5b   : > { %1398 = vmatmul.mubr.msk.bf16.gmra.mrb[28].mxu0 %vm319_vm1, %v1516_v13 }
  0x5c   : > { %487 = vmatprep.mubr.bf16.mxu0 %v1621_v0 }
  0x63   : > { %1399 = vmatmul.mubr.msk.bf16.gmra.mrb[32].mxu0 %vm319_vm1, %v1517_v14 }
  0x64   : > { %497 = vmatprep.mubr.bf16.mxu0 %v1621_v0 }
  0x6b   : > { %1400 = vmatmul.mubr.msk.bf16.gmra.mrb[36].mxu0 %vm319_vm1, %v1518_v15 }
  0x6c   : > { %507 = vmatprep.mubr.bf16.mxu0 %v1621_v0 }
  0x73   : > { %1401 = vmatmul.mubr.msk.bf16.gmra.mrb[40].mxu0 %vm319_vm1, %v1519_v16 }
  0x74   : > { %517 = vmatprep.mubr.bf16.mxu0 %v1621_v0 }
  0x7b   : > { %1402 = vmatmul.mubr.msk.bf16.gmra.mrb[44].mxu0 %vm319_vm1, %v1520_v17 }
  0x7c   : > { %527 = vmatprep.mubr.bf16.mxu0 %v1621_v0 }
  0x83   : > { %1403 = vmatmul.mubr.msk.bf16.gmra.mrb[48].mxu0 %vm319_vm1, %v1521_v18 }
  0x84   : > { %537 = vmatprep.mubr.bf16.mxu0 %v1621_v0 }
  0x8b   : > { %1404 = vmatmul.mubr.msk.bf16.gmra.mrb[52].mxu0 %vm319_vm1, %v1522_v19 }
  0x8c   : > { %547 = vmatprep.mubr.bf16.mxu0 %v1621_v0 }
  0x93   : > { %1405 = vmatmul.mubr.msk.bf16.gmra.mrb[56].mxu0 %vm319_vm1, %v1523_v20 }
  0x94   : > { %557 = vmatprep.mubr.bf16.mxu0 %v1621_v0 }
  0x9b   : > { %1406 = vmatmul.mubr.msk.bf16.gmra.mrb[60].mxu0 %vm319_vm1, %v1524_v21 }
  0xf6   : > { %v409_v30 = vpop.f32.mrb[0].mxu0 }
  0xf7   : > { %v411_v31 = vpop.f32.mrb[1].mxu0  ;;  %v568_v34 = vmax.f32 %v409_v30, 0.0 }
  0xf8   : > { %v413_v33 = vpop.f32.mrb[2].mxu0  ;;  %v569_v37 = vmax.f32 %v411_v31, 0.0 }
  0xf9   : > { %v570_v35 = vmax.f32 %v413_v33, 0.0  ;;  %v415_v36 = vpop.f32.mrb[3].mxu0 }
  0xfa   : > { %v571_v38 = vmax.f32 %v415_v36, 0.0 }
  0xfb   : > { %v632_v39 = vpack.c.bf16 %v570_v35, %v568_v34 }
  0xfc   : > { %v633_v40 = vpack.c.bf16 %v571_v38, %v569_v37 }
  0xfe   : > { %v419_v41 = vpop.f32.mrb[4].mxu0  ;;  %690 = vmatprep.subr.bf16.mxu1 %v633_v40 }
  0xff   : > { %v421_v42 = vpop.f32.mrb[5].mxu0  ;;  %691 = vmatpush1.bf16.msra.mxu1 %v632_v39  ;;  %v572_v44 = vmax.f32 %v419_v41, 0.0 }
 0x100   : > { %v423_v43 = vpop.f32.mrb[6].mxu0  ;;  %v573_v47 = vmax.f32 %v421_v42, 0.0 }
 0x101   : > { %v574_v45 = vmax.f32 %v423_v43, 0.0  ;;  %v425_v46 = vpop.f32.mrb[7].mxu0 }
 0x102   : > { %v575_v48 = vmax.f32 %v425_v46, 0.0 }
 0x103   : > { %v634_v49 = vpack.c.bf16 %v574_v45, %v572_v44 }
 0x104   : > { %v635_v50 = vpack.c.bf16 %v575_v48, %v573_v47 }
 0x106   : > { %v429_v51 = vpop.f32.mrb[8].mxu0  ;;  %692 = vmatprep.subr.bf16.mxu1 %v635_v50 }
 0x107   : > { %v431_v52 = vpop.f32.mrb[9].mxu0  ;;  %693 = vmatpush1.bf16.msra.mxu1 %v634_v49  ;;  %v576_v54 = vmax.f32 %v429_v51, 0.0 }
 0x108   : > { %v433_v53 = vpop.f32.mrb[10].mxu0  ;;  %v577_v57 = vmax.f32 %v431_v52, 0.0 }
 0x109   : > { %v578_v55 = vmax.f32 %v433_v53, 0.0  ;;  %v435_v56 = vpop.f32.mrb[11].mxu0 }
 0x10a   : > { %v579_v58 = vmax.f32 %v435_v56, 0.0 }
 0x10b   : > { %v636_v59 = vpack.c.bf16 %v578_v55, %v576_v54 }
 0x10c   : > { %v637_v60 = vpack.c.bf16 %v579_v58, %v577_v57 }
 0x10e   : > { %v439_v61 = vpop.f32.mrb[12].mxu0  ;;  %694 = vmatprep.subr.bf16.mxu1 %v637_v60 }
 0x10f   : > { %v441_v62 = vpop.f32.mrb[13].mxu0  ;;  %695 = vmatpush1.bf16.msra.mxu1 %v636_v59  ;;  %v580_v1 = vmax.f32 %v439_v61, 0.0 }
 0x110   : > { %v443_v63 = vpop.f32.mrb[14].mxu0  ;;  %v581_v6 = vmax.f32 %v441_v62, 0.0 }
 0x111   : > { %v582_v2 = vmax.f32 %v443_v63, 0.0  ;;  %v445_v3 = vpop.f32.mrb[15].mxu0 }
 0x112   : > { %v583_v7 = vmax.f32 %v445_v3, 0.0 }
 0x113   : > { %v638_v8 = vpack.c.bf16 %v582_v2, %v580_v1 }
 0x114   : > { %v639_v9 = vpack.c.bf16 %v583_v7, %v581_v6 }
 0x116   : > { %v449_v10 = vpop.f32.mrb[16].mxu0  ;;  %696 = vmatprep.subr.bf16.mxu1 %v639_v9 }
 0x117   : > { %v451_v11 = vpop.f32.mrb[17].mxu0  ;;  %697 = vmatpush1.bf16.msra.mxu1 %v638_v8  ;;  %v584_v13 = vmax.f32 %v449_v10, 0.0 }
 0x118   : > { %v453_v12 = vpop.f32.mrb[18].mxu0  ;;  %v585_v16 = vmax.f32 %v451_v11, 0.0 }
 0x119   : > { %v586_v14 = vmax.f32 %v453_v12, 0.0  ;;  %v455_v15 = vpop.f32.mrb[19].mxu0 }
 0x11a   : > { %v587_v17 = vmax.f32 %v455_v15, 0.0 }
 0x11b   : > { %v640_v18 = vpack.c.bf16 %v586_v14, %v584_v13 }
 0x11c   : > { %v641_v19 = vpack.c.bf16 %v587_v17, %v585_v16 }
 0x11e   : > { %v459_v20 = vpop.f32.mrb[20].mxu0  ;;  %698 = vmatprep.subr.bf16.mxu1 %v641_v19 }
 0x11f   : > { %v461_v21 = vpop.f32.mrb[21].mxu0  ;;  %699 = vmatpush1.bf16.msra.mxu1 %v640_v18  ;;  %v588_v23 = vmax.f32 %v459_v20, 0.0 }
 0x120   : > { %v463_v22 = vpop.f32.mrb[22].mxu0  ;;  %v589_v28 = vmax.f32 %v461_v21, 0.0 }
 0x121   : > { %v590_v24 = vmax.f32 %v463_v22, 0.0  ;;  %v465_v25 = vpop.f32.mrb[23].mxu0 }
 0x122   : > { %v591_v30 = vmax.f32 %v465_v25, 0.0 }
 0x123   : > { %v642_v31 = vpack.c.bf16 %v590_v24, %v588_v23 }
 0x124   : > { %v643_v32 = vpack.c.bf16 %v591_v30, %v589_v28 }
 0x126   : > { %v469_v33 = vpop.f32.mrb[24].mxu0  ;;  %700 = vmatprep.subr.bf16.mxu1 %v643_v32 }
 0x127   : > { %v471_v34 = vpop.f32.mrb[25].mxu0  ;;  %701 = vmatpush1.bf16.msra.mxu1 %v642_v31  ;;  %v592_v36 = vmax.f32 %v469_v33, 0.0 }
 0x128   : > { %v473_v35 = vpop.f32.mrb[26].mxu0  ;;  %v593_v39 = vmax.f32 %v471_v34, 0.0 }
 0x129   : > { %v594_v37 = vmax.f32 %v473_v35, 0.0  ;;  %v475_v38 = vpop.f32.mrb[27].mxu0 }
 0x12a   : > { %v595_v40 = vmax.f32 %v475_v38, 0.0 }
 0x12b   : > { %v644_v41 = vpack.c.bf16 %v594_v37, %v592_v36 }
 0x12c   : > { %v645_v42 = vpack.c.bf16 %v595_v40, %v593_v39 }
 0x12e   : > { %v479_v43 = vpop.f32.mrb[28].mxu0  ;;  %702 = vmatprep.subr.bf16.mxu1 %v645_v42 }
 0x12f   : > { %v481_v44 = vpop.f32.mrb[29].mxu0  ;;  %703 = vmatpush1.bf16.msra.mxu1 %v644_v41  ;;  %v596_v46 = vmax.f32 %v479_v43, 0.0 }
 0x130   : > { %v483_v45 = vpop.f32.mrb[30].mxu0  ;;  %v597_v49 = vmax.f32 %v481_v44, 0.0 }
 0x131   : > { %v598_v47 = vmax.f32 %v483_v45, 0.0  ;;  %v485_v48 = vpop.f32.mrb[31].mxu0 }
 0x132   : > { %v599_v50 = vmax.f32 %v485_v48, 0.0 }
 0x133   : > { %v646_v51 = vpack.c.bf16 %v598_v47, %v596_v46 }
 0x134   : > { %v647_v52 = vpack.c.bf16 %v599_v50, %v597_v49 }
 0x136   : > { %v489_v53 = vpop.f32.mrb[32].mxu0  ;;  %704 = vmatprep.subr.bf16.mxu1 %v647_v52 }
 0x137   : > { %v491_v54 = vpop.f32.mrb[33].mxu0  ;;  %705 = vmatpush1.bf16.msra.mxu1 %v646_v51  ;;  %v600_v56 = vmax.f32 %v489_v53, 0.0 }
 0x138   : > { %v493_v55 = vpop.f32.mrb[34].mxu0  ;;  %v601_v59 = vmax.f32 %v491_v54, 0.0 }
 0x139   : > { %v602_v57 = vmax.f32 %v493_v55, 0.0  ;;  %v495_v58 = vpop.f32.mrb[35].mxu0 }
 0x13a   : > { %v603_v60 = vmax.f32 %v495_v58, 0.0 }
 0x13b   : > { %v648_v61 = vpack.c.bf16 %v602_v57, %v600_v56 }
 0x13c   : > { %v649_v62 = vpack.c.bf16 %v603_v60, %v601_v59 }
 0x13e   : > { %v499_v63 = vpop.f32.mrb[36].mxu0  ;;  %706 = vmatprep.subr.bf16.mxu1 %v649_v62 }
 0x13f   : > { %v501_v1 = vpop.f32.mrb[37].mxu0  ;;  %707 = vmatpush1.bf16.msra.mxu1 %v648_v61  ;;  %v604_v3 = vmax.f32 %v499_v63, 0.0 }
 0x140   : > { %v503_v2 = vpop.f32.mrb[38].mxu0  ;;  %v605_v8 = vmax.f32 %v501_v1, 0.0 }
 0x141   : > { %v606_v6 = vmax.f32 %v503_v2, 0.0  ;;  %v505_v7 = vpop.f32.mrb[39].mxu0 }
 0x142   : > { %v607_v9 = vmax.f32 %v505_v7, 0.0 }
 0x143   : > { %v650_v10 = vpack.c.bf16 %v606_v6, %v604_v3 }
 0x144   : > { %v651_v11 = vpack.c.bf16 %v607_v9, %v605_v8 }
 0x146   : > { %v509_v12 = vpop.f32.mrb[40].mxu0  ;;  %708 = vmatprep.subr.bf16.mxu1 %v651_v11 }
 0x147   : > { %v511_v13 = vpop.f32.mrb[41].mxu0  ;;  %709 = vmatpush1.bf16.msra.mxu1 %v650_v10  ;;  %v608_v15 = vmax.f32 %v509_v12, 0.0 }
 0x148   : > { %v513_v14 = vpop.f32.mrb[42].mxu0  ;;  %v609_v18 = vmax.f32 %v511_v13, 0.0 }
 0x149   : > { %v610_v16 = vmax.f32 %v513_v14, 0.0  ;;  %v515_v17 = vpop.f32.mrb[43].mxu0  ;;  %v680_v14 = vrot.slane %v1798_v27, %v1803_v29  ;;  %v1526_v27 = vld [vmem:[%s1965_s1 + $0x88] sm:$0xff]  }
 0x14a   : > { %v611_v19 = vmax.f32 %v515_v17, 0.0  ;;  %v1530_v17 = vld [vmem:[%s1965_s1 + $0xa8] sm:$0xff]  }
 0x14b   : > { %v652_v20 = vpack.c.bf16 %v610_v16, %v608_v15  ;;  %v1525_v15 = vld [vmem:[%s1965_s1 + $0x80] sm:$0xff]  }
 0x14c   : > { %v653_v21 = vpack.c.bf16 %v611_v19, %v609_v18  ;;  %v1529_v16 = vld [vmem:[%s1965_s1 + $0xa0] sm:$0xff]   ;;  %v1531_v18 = vld [vmem:[%s1965_s1 + $0xb0] sm:$0xff]   ;;  %v1532_v19 = vld [vmem:[%s1965_s1 + $0xb8] sm:$0xff]  }
 0x14e   : > { %v519_v22 = vpop.f32.mrb[44].mxu0  ;;  %710 = vmatprep.subr.bf16.mxu1 %v653_v21  ;;  %v1534_v21 = vld [vmem:[%s1965_s1 + $0xc8] sm:$0xff]  }
 0x14f   : > { %v521_v23 = vpop.f32.mrb[45].mxu0  ;;  %711 = vmatpush1.bf16.msra.mxu1 %v652_v20  ;;  %v612_v25 = vmax.f32 %v519_v22, 0.0  ;;  %v1533_v20 = vld [vmem:[%s1965_s1 + $0xc0] sm:$0xff]   ;;  %v1535_v22 = vld [vmem:[%s1965_s1 + $0xd0] sm:$0xff]  }
 0x150   : > { %v523_v24 = vpop.f32.mrb[46].mxu0  ;;  %v613_v31 = vmax.f32 %v521_v23, 0.0  ;;  %v1536_v23 = vld [vmem:[%s1965_s1 + $0xd8] sm:$0xff]  }
 0x151   : > { %v614_v28 = vmax.f32 %v523_v24, 0.0  ;;  %v525_v30 = vpop.f32.mrb[47].mxu0  ;;  %v1537_v24 = vld [vmem:[%s1965_s1 + $0xe0] sm:$0xff]  }
 0x152   : > { %v615_v32 = vmax.f32 %v525_v30, 0.0  ;;  %v1540_v30 = vld [vmem:[%s1965_s1 + $0xf8] sm:$0xff]  }
 0x153   : > { %v654_v33 = vpack.c.bf16 %v614_v28, %v612_v25  ;;  %v1538_v25 = vld [vmem:[%s1965_s1 + $0xe8] sm:$0xff]   ;;  %v1539_v28 = vld [vmem:[%s1965_s1 + $0xf0] sm:$0xff]  }
 0x154   : > { %v655_v34 = vpack.c.bf16 %v615_v32, %v613_v31 }
 0x156   : > { %v529_v35 = vpop.f32.mrb[48].mxu0  ;;  %712 = vmatprep.subr.bf16.mxu1 %v655_v34 }
 0x157   : > { %v531_v36 = vpop.f32.mrb[49].mxu0  ;;  %713 = vmatpush1.bf16.msra.mxu1 %v654_v33  ;;  %v616_v38 = vmax.f32 %v529_v35, 0.0 }
 0x158   : > { %v533_v37 = vpop.f32.mrb[50].mxu0  ;;  %v617_v41 = vmax.f32 %v531_v36, 0.0 }
 0x159   : > { %v618_v39 = vmax.f32 %v533_v37, 0.0  ;;  %v535_v40 = vpop.f32.mrb[51].mxu0 }
 0x15a   : > { %v619_v42 = vmax.f32 %v535_v40, 0.0 }
 0x15b   : > { %v656_v43 = vpack.c.bf16 %v618_v39, %v616_v38 }
 0x15c   : > { %v657_v44 = vpack.c.bf16 %v619_v42, %v617_v41 }
 0x15e   : > { %v539_v45 = vpop.f32.mrb[52].mxu0  ;;  %714 = vmatprep.subr.bf16.mxu1 %v657_v44 }
 0x15f   : > { %v541_v46 = vpop.f32.mrb[53].mxu0  ;;  %715 = vmatpush1.bf16.msra.mxu1 %v656_v43  ;;  %v620_v48 = vmax.f32 %v539_v45, 0.0 }
 0x160   : > { %v543_v47 = vpop.f32.mrb[54].mxu0  ;;  %v621_v51 = vmax.f32 %v541_v46, 0.0 }
 0x161   : > { %v622_v49 = vmax.f32 %v543_v47, 0.0  ;;  %v545_v50 = vpop.f32.mrb[55].mxu0 }
 0x162   : > { %v623_v52 = vmax.f32 %v545_v50, 0.0 }
 0x163   : > { %v658_v53 = vpack.c.bf16 %v622_v49, %v620_v48 }
 0x164   : > { %v659_v54 = vpack.c.bf16 %v623_v52, %v621_v51 }
 0x166   : > { %v549_v55 = vpop.f32.mrb[56].mxu0  ;;  %716 = vmatprep.subr.bf16.mxu1 %v659_v54 }
 0x167   : > { %v551_v56 = vpop.f32.mrb[57].mxu0  ;;  %717 = vmatpush1.bf16.msra.mxu1 %v658_v53  ;;  %v624_v58 = vmax.f32 %v549_v55, 0.0 }
 0x168   : > { %v553_v57 = vpop.f32.mrb[58].mxu0  ;;  %v625_v61 = vmax.f32 %v551_v56, 0.0 }
 0x169   : > { %v626_v59 = vmax.f32 %v553_v57, 0.0  ;;  %v555_v60 = vpop.f32.mrb[59].mxu0 }
 0x16a   : > { %v627_v62 = vmax.f32 %v555_v60, 0.0 }
 0x16b   : > { %v660_v63 = vpack.c.bf16 %v626_v59, %v624_v58 }
 0x16c   : > { %v661_v1 = vpack.c.bf16 %v627_v62, %v625_v61 }
 0x16e   : > { %v559_v2 = vpop.f32.mrb[60].mxu0  ;;  %718 = vmatprep.subr.bf16.mxu1 %v661_v1 }
 0x16f   : > { %v561_v3 = vpop.f32.mrb[61].mxu0  ;;  %719 = vmatpush1.bf16.msra.mxu1 %v660_v63  ;;  %v628_v7 = vmax.f32 %v559_v2, 0.0 }
 0x170   : > { %v563_v6 = vpop.f32.mrb[62].mxu0  ;;  %v629_v10 = vmax.f32 %v561_v3, 0.0 }
 0x171   : > { %v630_v8 = vmax.f32 %v563_v6, 0.0  ;;  %v565_v9 = vpop.f32.mrb[63].mxu0 }
 0x172   : > { %v631_v11 = vmax.f32 %v565_v9, 0.0 }
 0x173   : > { %v662_v12 = vpack.c.bf16 %v630_v8, %v628_v7 }
 0x174   : > { %v663_v13 = vpack.c.bf16 %v631_v11, %v629_v10 }
 0x176   : > { %720 = vmatprep.subr.bf16.mxu1 %v663_v13 }
 0x177   : > { %721 = vmatpush1.bf16.msra.mxu1 %v662_v12 }
 0x178   : > { %1425 = vmatprep.subr.msk.bf16.mxu1 %vm368_vm0, %v1706_v4  ;;  %v1527_v4 = vld [vmem:[%s1965_s1 + $0x90] sm:$0xff]  }
 0x17a   : > { %723 = vmatmul.mubr.bf16.vlgmr.msra.gmra.mrb[0].mxu1 %v680_v14 }
 0x17b   : > { %904 = vmatpush1.bf16.msra.mxu1 %v1709_v5  ;;  %935 = vmatprep.mubr.bf16.mxu1 %v1621_v0  ;;  %v1528_v5 = vld [vmem:[%s1965_s1 + $0x98] sm:$0xff]  }
 0x182   : > { %1426 = vmatmul.mubr.msk.bf16.vlgmr.msra.gmra.mrb[4].mxu1 %vm319_vm1, %v1525_v15 }
 0x183   : > { %945 = vmatprep.mubr.bf16.mxu1 %v1621_v0 }
 0x18a   : > { %1427 = vmatmul.mubr.msk.bf16.gmra.mrb[8].mxu1 %vm319_vm1, %v1526_v27 }
 0x18b   : > { %955 = vmatprep.mubr.bf16.mxu1 %v1621_v0 }
 0x192   : > { %1428 = vmatmul.mubr.msk.bf16.gmra.mrb[12].mxu1 %vm319_vm1, %v1527_v4 }
 0x193   : > { %965 = vmatprep.mubr.bf16.mxu1 %v1621_v0 }
 0x19a   : > { %1429 = vmatmul.mubr.msk.bf16.gmra.mrb[16].mxu1 %vm319_vm1, %v1528_v5 }
 0x19b   : > { %975 = vmatprep.mubr.bf16.mxu1 %v1621_v0 }
 0x1a2   : > { %1430 = vmatmul.mubr.msk.bf16.gmra.mrb[20].mxu1 %vm319_vm1, %v1529_v16 }
 0x1a3   : > { %985 = vmatprep.mubr.bf16.mxu1 %v1621_v0 }
 0x1aa   : > { %1431 = vmatmul.mubr.msk.bf16.gmra.mrb[24].mxu1 %vm319_vm1, %v1530_v17 }
 0x1ab   : > { %995 = vmatprep.mubr.bf16.mxu1 %v1621_v0 }
 0x1b2   : > { %1432 = vmatmul.mubr.msk.bf16.gmra.mrb[28].mxu1 %vm319_vm1, %v1531_v18 }
 0x1b3   : > { %1005 = vmatprep.mubr.bf16.mxu1 %v1621_v0 }
 0x1ba   : > { %1433 = vmatmul.mubr.msk.bf16.gmra.mrb[32].mxu1 %vm319_vm1, %v1532_v19 }
 0x1bb   : > { %1015 = vmatprep.mubr.bf16.mxu1 %v1621_v0 }
 0x1c2   : > { %1434 = vmatmul.mubr.msk.bf16.gmra.mrb[36].mxu1 %vm319_vm1, %v1533_v20 }
 0x1c3   : > { %1025 = vmatprep.mubr.bf16.mxu1 %v1621_v0 }
 0x1ca   : > { %1435 = vmatmul.mubr.msk.bf16.gmra.mrb[40].mxu1 %vm319_vm1, %v1534_v21 }
 0x1cb   : > { %1035 = vmatprep.mubr.bf16.mxu1 %v1621_v0 }
 0x1d2   : > { %1436 = vmatmul.mubr.msk.bf16.gmra.mrb[44].mxu1 %vm319_vm1, %v1535_v22 }
 0x1d3   : > { %1045 = vmatprep.mubr.bf16.mxu1 %v1621_v0 }
 0x1da   : > { %1437 = vmatmul.mubr.msk.bf16.gmra.mrb[48].mxu1 %vm319_vm1, %v1536_v23 }
 0x1db   : > { %1055 = vmatprep.mubr.bf16.mxu1 %v1621_v0 }
 0x1e2   : > { %1438 = vmatmul.mubr.msk.bf16.gmra.mrb[52].mxu1 %vm319_vm1, %v1537_v24 }
 0x1e3   : > { %1065 = vmatprep.mubr.bf16.mxu1 %v1621_v0 }
 0x1ea   : > { %1439 = vmatmul.mubr.msk.bf16.gmra.mrb[56].mxu1 %vm319_vm1, %v1538_v25 }
 0x1eb   : > { %1075 = vmatprep.mubr.bf16.mxu1 %v1621_v0 }
 0x1f2   : > { %1440 = vmatmul.mubr.msk.bf16.gmra.mrb[60].mxu1 %vm319_vm1, %v1539_v28 }
 0x1f3   : > { %1085 = vmatprep.mubr.bf16.mxu1 %v1621_v0  ;;  %v1900_v0 = vld.sshfl [vmem:[%s1966_s2 + $0x2] sm:$0x11 pattern:$0x75316420] }
 0x1f4   : > { %v1201_v36 = vcombine.high %v1900_v0, %v1900_v0 }
 0x1f6   : > { %v1215_v39 = vrot.slane %v1201_v36, %v1803_v29 }
 0x1f8   : > { %1250 = vmatprep.mubr.bf16.mxu0 %v1215_v39 }
 0x1fa   : > { %1441 = vmatmul.mubr.msk.bf16.gmra.mrb[64].mxu1 %vm319_vm1, %v1540_v30 }
 0x24d   : > { %v724_v31 = vpop.f32.mrb[0].mxu1 }
 0x24e   : > { %v726_v32 = vpop.f32.mrb[1].mxu1 }
 0x24f   : > { %v733_v33 = vcombine.low %v724_v31, %v726_v32  ;;  %v728_v34 = vpop.f32.mrb[2].mxu1 }
 0x250   : > { %v729_v35 = vpop.f32.mrb[3].mxu1 }
 0x251   : > { %1408 = vst.sshfl [vmem:[%s1894_s4] sm:$0x33 pattern:$0x76325410] %v733_v33 }
 0x255   : > { %v937_v37 = vpop.f32.mrb[4].mxu1 }
 0x256   : > { %v939_v38 = vpop.f32.mrb[5].mxu1  ;;  %v1096_v41 = vmax.f32 %v937_v37, 0.0 }
 0x257   : > { %v941_v40 = vpop.f32.mrb[6].mxu1  ;;  %v1097_v44 = vmax.f32 %v939_v38, 0.0 }
 0x258   : > { %v1098_v42 = vmax.f32 %v941_v40, 0.0  ;;  %v943_v43 = vpop.f32.mrb[7].mxu1 }
 0x259   : > { %v1099_v45 = vmax.f32 %v943_v43, 0.0 }
 0x25a   : > { %v1160_v46 = vpack.c.bf16 %v1098_v42, %v1096_v41 }
 0x25b   : > { %v1161_v47 = vpack.c.bf16 %v1099_v45, %v1097_v44 }
 0x25d   : > { %v947_v48 = vpop.f32.mrb[8].mxu1  ;;  %1218 = vmatprep.subr.bf16.mxu0 %v1161_v47 }
 0x25e   : > { %v949_v49 = vpop.f32.mrb[9].mxu1  ;;  %1219 = vmatpush1.bf16.msra.mxu0 %v1160_v46  ;;  %v1100_v51 = vmax.f32 %v947_v48, 0.0 }
 0x25f   : > { %v951_v50 = vpop.f32.mrb[10].mxu1  ;;  %v1101_v54 = vmax.f32 %v949_v49, 0.0 }
 0x260   : > { %v1102_v52 = vmax.f32 %v951_v50, 0.0  ;;  %v953_v53 = vpop.f32.mrb[11].mxu1 }
 0x261   : > { %v1103_v55 = vmax.f32 %v953_v53, 0.0 }
 0x262   : > { %v1162_v56 = vpack.c.bf16 %v1102_v52, %v1100_v51 }
 0x263   : > { %v1163_v57 = vpack.c.bf16 %v1103_v55, %v1101_v54 }
 0x265   : > { %v957_v58 = vpop.f32.mrb[12].mxu1  ;;  %1220 = vmatprep.subr.bf16.mxu0 %v1163_v57 }
 0x266   : > { %v959_v59 = vpop.f32.mrb[13].mxu1  ;;  %1221 = vmatpush1.bf16.msra.mxu0 %v1162_v56  ;;  %v1104_v61 = vmax.f32 %v957_v58, 0.0 }
 0x267   : > { %v961_v60 = vpop.f32.mrb[14].mxu1  ;;  %v1105_v1 = vmax.f32 %v959_v59, 0.0 }
 0x268   : > { %v1106_v62 = vmax.f32 %v961_v60, 0.0  ;;  %v963_v63 = vpop.f32.mrb[15].mxu1 }
 0x269   : > { %v1107_v2 = vmax.f32 %v963_v63, 0.0 }
 0x26a   : > { %v1164_v3 = vpack.c.bf16 %v1106_v62, %v1104_v61 }
 0x26b   : > { %v1165_v6 = vpack.c.bf16 %v1107_v2, %v1105_v1 }
 0x26d   : > { %v967_v7 = vpop.f32.mrb[16].mxu1  ;;  %1222 = vmatprep.subr.bf16.mxu0 %v1165_v6 }
 0x26e   : > { %v969_v8 = vpop.f32.mrb[17].mxu1  ;;  %1223 = vmatpush1.bf16.msra.mxu0 %v1164_v3  ;;  %v1108_v10 = vmax.f32 %v967_v7, 0.0 }
 0x26f   : > { %v971_v9 = vpop.f32.mrb[18].mxu1  ;;  %v1109_v13 = vmax.f32 %v969_v8, 0.0 }
 0x270   : > { %v1110_v11 = vmax.f32 %v971_v9, 0.0  ;;  %v973_v12 = vpop.f32.mrb[19].mxu1 }
 0x271   : > { %v1111_v14 = vmax.f32 %v973_v12, 0.0 }
 0x272   : > { %v1166_v15 = vpack.c.bf16 %v1110_v11, %v1108_v10 }
 0x273   : > { %v1167_v27 = vpack.c.bf16 %v1111_v14, %v1109_v13 }
 0x275   : > { %v977_v4 = vpop.f32.mrb[20].mxu1  ;;  %1224 = vmatprep.subr.bf16.mxu0 %v1167_v27 }
 0x276   : > { %v979_v5 = vpop.f32.mrb[21].mxu1  ;;  %1225 = vmatpush1.bf16.msra.mxu0 %v1166_v15  ;;  %v1112_v17 = vmax.f32 %v977_v4, 0.0 }
 0x277   : > { %v981_v16 = vpop.f32.mrb[22].mxu1  ;;  %v1113_v20 = vmax.f32 %v979_v5, 0.0 }
 0x278   : > { %v1114_v18 = vmax.f32 %v981_v16, 0.0  ;;  %v983_v19 = vpop.f32.mrb[23].mxu1 }
 0x279   : > { %v1115_v21 = vmax.f32 %v983_v19, 0.0 }
 0x27a   : > { %v1168_v22 = vpack.c.bf16 %v1114_v18, %v1112_v17 }
 0x27b   : > { %v1169_v23 = vpack.c.bf16 %v1115_v21, %v1113_v20 }
 0x27d   : > { %v987_v24 = vpop.f32.mrb[24].mxu1  ;;  %1226 = vmatprep.subr.bf16.mxu0 %v1169_v23 }
 0x27e   : > { %v989_v25 = vpop.f32.mrb[25].mxu1  ;;  %1227 = vmatpush1.bf16.msra.mxu0 %v1168_v22  ;;  %v1116_v30 = vmax.f32 %v987_v24, 0.0 }
 0x27f   : > { %v991_v28 = vpop.f32.mrb[26].mxu1  ;;  %v1117_v33 = vmax.f32 %v989_v25, 0.0 }
 0x280   : > { %v1118_v31 = vmax.f32 %v991_v28, 0.0  ;;  %v993_v32 = vpop.f32.mrb[27].mxu1 }
 0x281   : > { %v1119_v34 = vmax.f32 %v993_v32, 0.0 }
 0x282   : > { %v1170_v35 = vpack.c.bf16 %v1118_v31, %v1116_v30 }
 0x283   : > { %v1171_v36 = vpack.c.bf16 %v1119_v34, %v1117_v33 }
 0x285   : > { %v997_v37 = vpop.f32.mrb[28].mxu1  ;;  %1228 = vmatprep.subr.bf16.mxu0 %v1171_v36 }
 0x286   : > { %v999_v38 = vpop.f32.mrb[29].mxu1  ;;  %1229 = vmatpush1.bf16.msra.mxu0 %v1170_v35  ;;  %v1120_v40 = vmax.f32 %v997_v37, 0.0 }
 0x287   : > { %v1001_v39 = vpop.f32.mrb[30].mxu1  ;;  %v1121_v43 = vmax.f32 %v999_v38, 0.0 }
 0x288   : > { %v1122_v41 = vmax.f32 %v1001_v39, 0.0  ;;  %v1003_v42 = vpop.f32.mrb[31].mxu1 }
 0x289   : > { %v1123_v44 = vmax.f32 %v1003_v42, 0.0 }
 0x28a   : > { %v1172_v45 = vpack.c.bf16 %v1122_v41, %v1120_v40 }
 0x28b   : > { %v1173_v46 = vpack.c.bf16 %v1123_v44, %v1121_v43 }
 0x28d   : > { %v1007_v47 = vpop.f32.mrb[32].mxu1  ;;  %1230 = vmatprep.subr.bf16.mxu0 %v1173_v46 }
 0x28e   : > { %v1009_v48 = vpop.f32.mrb[33].mxu1  ;;  %1231 = vmatpush1.bf16.msra.mxu0 %v1172_v45  ;;  %v1124_v50 = vmax.f32 %v1007_v47, 0.0 }
 0x28f   : > { %v1011_v49 = vpop.f32.mrb[34].mxu1  ;;  %v1125_v53 = vmax.f32 %v1009_v48, 0.0 }
 0x290   : > { %v1126_v51 = vmax.f32 %v1011_v49, 0.0  ;;  %v1013_v52 = vpop.f32.mrb[35].mxu1 }
 0x291   : > { %v1127_v54 = vmax.f32 %v1013_v52, 0.0 }
 0x292   : > { %v1174_v55 = vpack.c.bf16 %v1126_v51, %v1124_v50 }
 0x293   : > { %v1175_v56 = vpack.c.bf16 %v1127_v54, %v1125_v53 }
 0x295   : > { %v1017_v57 = vpop.f32.mrb[36].mxu1  ;;  %1232 = vmatprep.subr.bf16.mxu0 %v1175_v56 }
 0x296   : > { %v1019_v58 = vpop.f32.mrb[37].mxu1  ;;  %1233 = vmatpush1.bf16.msra.mxu0 %v1174_v55  ;;  %v1128_v60 = vmax.f32 %v1017_v57, 0.0 }
 0x297   : > { %v1021_v59 = vpop.f32.mrb[38].mxu1  ;;  %v1129_v63 = vmax.f32 %v1019_v58, 0.0 }
 0x298   : > { %v1130_v61 = vmax.f32 %v1021_v59, 0.0  ;;  %v1023_v62 = vpop.f32.mrb[39].mxu1 }
 0x299   : > { %v1131_v1 = vmax.f32 %v1023_v62, 0.0 }
 0x29a   : > { %v1176_v2 = vpack.c.bf16 %v1130_v61, %v1128_v60 }
 0x29b   : > { %v1177_v3 = vpack.c.bf16 %v1131_v1, %v1129_v63 }
 0x29d   : > { %v1027_v6 = vpop.f32.mrb[40].mxu1  ;;  %1234 = vmatprep.subr.bf16.mxu0 %v1177_v3 }
 0x29e   : > { %v1029_v7 = vpop.f32.mrb[41].mxu1  ;;  %1235 = vmatpush1.bf16.msra.mxu0 %v1176_v2  ;;  %v1132_v9 = vmax.f32 %v1027_v6, 0.0 }
 0x29f   : > { %v1031_v8 = vpop.f32.mrb[42].mxu1  ;;  %v1133_v12 = vmax.f32 %v1029_v7, 0.0 }
 0x2a0   : > { %v1134_v10 = vmax.f32 %v1031_v8, 0.0  ;;  %v1033_v11 = vpop.f32.mrb[43].mxu1 }
 0x2a1   : > { %v1135_v13 = vmax.f32 %v1033_v11, 0.0 }
 0x2a2   : > { %v1178_v14 = vpack.c.bf16 %v1134_v10, %v1132_v9 }
 0x2a3   : > { %v1179_v15 = vpack.c.bf16 %v1135_v13, %v1133_v12 }
 0x2a5   : > { %v1037_v27 = vpop.f32.mrb[44].mxu1  ;;  %1236 = vmatprep.subr.bf16.mxu0 %v1179_v15  ;;  %v1208_v15 = vrot.slane %v1900_v0, %v1803_v29 }
 0x2a6   : > { %v1039_v4 = vpop.f32.mrb[45].mxu1  ;;  %1237 = vmatpush1.bf16.msra.mxu0 %v1178_v14  ;;  %v1136_v16 = vmax.f32 %v1037_v27, 0.0  ;;  %v1623_v27 = vmov 1983009808  }
 0x2a7   : > { %v1041_v5 = vpop.f32.mrb[46].mxu1  ;;  %v1137_v19 = vmax.f32 %v1039_v4, 0.0  ;;  %v1264_v4 = vunpack.c.l.s4 %v1623_v27 }
 0x2a8   : > { %v1138_v17 = vmax.f32 %v1041_v5, 0.0  ;;  %v1043_v18 = vpop.f32.mrb[47].mxu1 }
 0x2a9   : > { %v1139_v20 = vmax.f32 %v1043_v18, 0.0  ;;  %v1265_v5 = vunpack.c.0.s8 %v1264_v4 }
 0x2aa   : > { %v1180_v21 = vpack.c.bf16 %v1138_v17, %v1136_v16 }
 0x2ab   : > { %v1181_v22 = vpack.c.bf16 %v1139_v20, %v1137_v19  ;;  %v1268_v17 = vsub.s32 %v1265_v5, %v1793_v26 }
 0x2ad   : > { %v1047_v23 = vpop.f32.mrb[48].mxu1  ;;  %1238 = vmatprep.subr.bf16.mxu0 %v1181_v22 }
 0x2ae   : > { %v1049_v24 = vpop.f32.mrb[49].mxu1  ;;  %1239 = vmatpush1.bf16.msra.mxu0 %v1180_v21  ;;  %v1140_v28 = vmax.f32 %v1047_v23, 0.0  ;;  %v1259_v23 = vld [vmem:[%s1894_s4] sm:$0xf] }
 0x2af   : > { %v1051_v25 = vpop.f32.mrb[50].mxu1  ;;  %v1141_v32 = vmax.f32 %v1049_v24, 0.0 }
 0x2b0   : > { %v1142_v30 = vmax.f32 %v1051_v25, 0.0  ;;  %v1053_v31 = vpop.f32.mrb[51].mxu1 }
 0x2b1   : > { %v1143_v33 = vmax.f32 %v1053_v31, 0.0 }
 0x2b2   : > { %v1182_v34 = vpack.c.bf16 %v1142_v30, %v1140_v28 }
 0x2b3   : > { %v1183_v35 = vpack.c.bf16 %v1143_v33, %v1141_v32 }
 0x2b5   : > { %v1057_v36 = vpop.f32.mrb[52].mxu1  ;;  %1240 = vmatprep.subr.bf16.mxu0 %v1183_v35 }
 0x2b6   : > { %v1059_v37 = vpop.f32.mrb[53].mxu1  ;;  %1241 = vmatpush1.bf16.msra.mxu0 %v1182_v34  ;;  %v1144_v39 = vmax.f32 %v1057_v36, 0.0 }
 0x2b7   : > { %v1061_v38 = vpop.f32.mrb[54].mxu1  ;;  %v1145_v42 = vmax.f32 %v1059_v37, 0.0 }
 0x2b8   : > { %v1146_v40 = vmax.f32 %v1061_v38, 0.0  ;;  %v1063_v41 = vpop.f32.mrb[55].mxu1 }
 0x2b9   : > { %v1147_v43 = vmax.f32 %v1063_v41, 0.0 }
 0x2ba   : > { %v1184_v44 = vpack.c.bf16 %v1146_v40, %v1144_v39 }
 0x2bb   : > { %v1185_v45 = vpack.c.bf16 %v1147_v43, %v1145_v42 }
 0x2bd   : > { %v1067_v46 = vpop.f32.mrb[56].mxu1  ;;  %1242 = vmatprep.subr.bf16.mxu0 %v1185_v45 }
 0x2be   : > { %v1069_v47 = vpop.f32.mrb[57].mxu1  ;;  %1243 = vmatpush1.bf16.msra.mxu0 %v1184_v44  ;;  %v1148_v49 = vmax.f32 %v1067_v46, 0.0 }
 0x2bf   : > { %v1071_v48 = vpop.f32.mrb[58].mxu1  ;;  %v1149_v52 = vmax.f32 %v1069_v47, 0.0 }
 0x2c0   : > { %v1150_v50 = vmax.f32 %v1071_v48, 0.0  ;;  %v1073_v51 = vpop.f32.mrb[59].mxu1 }
 0x2c1   : > { %v1151_v53 = vmax.f32 %v1073_v51, 0.0 }
 0x2c2   : > { %v1186_v54 = vpack.c.bf16 %v1150_v50, %v1148_v49 }
 0x2c3   : > { %v1187_v55 = vpack.c.bf16 %v1151_v53, %v1149_v52 }
 0x2c5   : > { %v1077_v56 = vpop.f32.mrb[60].mxu1  ;;  %1244 = vmatprep.subr.bf16.mxu0 %v1187_v55 }
 0x2c6   : > { %v1079_v57 = vpop.f32.mrb[61].mxu1  ;;  %1245 = vmatpush1.bf16.msra.mxu0 %v1186_v54  ;;  %v1152_v59 = vmax.f32 %v1077_v56, 0.0 }
 0x2c7   : > { %v1081_v58 = vpop.f32.mrb[62].mxu1  ;;  %v1153_v62 = vmax.f32 %v1079_v57, 0.0 }
 0x2c8   : > { %v1154_v60 = vmax.f32 %v1081_v58, 0.0  ;;  %v1083_v61 = vpop.f32.mrb[63].mxu1 }
 0x2c9   : > { %v1155_v63 = vmax.f32 %v1083_v61, 0.0 }
 0x2ca   : > { %v1188_v1 = vpack.c.bf16 %v1154_v60, %v1152_v59 }
 0x2cb   : > { %v1189_v2 = vpack.c.bf16 %v1155_v63, %v1153_v62 }
 0x2cd   : > { %v1087_v3 = vpop.f32.mrb[64].mxu1  ;;  %1246 = vmatprep.subr.bf16.mxu0 %v1189_v2 }
 0x2ce   : > { %v1089_v6 = vpop.f32.mrb[65].mxu1  ;;  %1247 = vmatpush1.bf16.msra.mxu0 %v1188_v1  ;;  %v1156_v8 = vmax.f32 %v1087_v3, 0.0 }
 0x2cf   : > { %v1091_v7 = vpop.f32.mrb[66].mxu1  ;;  %v1157_v11 = vmax.f32 %v1089_v6, 0.0 }
 0x2d0   : > { %v1158_v9 = vmax.f32 %v1091_v7, 0.0  ;;  %v1093_v10 = vpop.f32.mrb[67].mxu1 }
 0x2d1   : > { %v1159_v12 = vmax.f32 %v1093_v10, 0.0 }
 0x2d2   : > { %v1190_v13 = vpack.c.bf16 %v1158_v9, %v1156_v8 }
 0x2d3   : > { %v1191_v14 = vpack.c.bf16 %v1159_v12, %v1157_v11 }
 0x2d5   : > { %1248 = vmatprep.subr.bf16.mxu0 %v1191_v14 }
 0x2d6   : > { %1249 = vmatpush1.bf16.msra.mxu0 %v1190_v13 }
 0x2d9   : > { %1251 = vmatmul.mubr.bf16.vlgmr.msra.gmra.mrb[64].mxu0 %v1208_v15 }
 0x3ac   : > { %v1252_v16 = vpop.f32.mrb[64].mxu0 }
 0x3ad   : > { %v1254_v18 = vpop.f32.mrb[65].mxu0 }
 0x3ae   : > { %v1262_v19 = vcombine.low %v1252_v16, %v1254_v18  ;;  %v1256_v20 = vpop.f32.mrb[66].mxu0 }
 0x3af   : > { %v1257_v21 = vpop.f32.mrb[67].mxu0 }
 0x3b0   : > { %v1269_v22 = vrot.slane %v1262_v19, %v1268_v17 }
 0x3b2   : > { %v1271_v29 = vadd.f32 %v1269_v22, %v1259_v23 }
 0x3b4   : > { %1272 = vst [vmem:[%s1894_s4] sm:$0xf] %v1271_v29 }
 0x3b5   : > { %1554 = shalt.err (!%p1551_p5)
}
 0x3b6   : > { %s1555_s26 = scalar_lea.hbm %s1914_s11, 64  ;;  %s1559_s29 = scalar_lea.hbm %s1967_s3, 128 }
 0x3b7   : > { %p1556_p6 = scmp.ne.s32.totalorder %s1914_s11, %s1555_s26  ;;  %p1560_p10 = scmp.lt.u32.totalorder %s1914_s11, %s1967_s3 }
 0x3b8   : > { %p1561_p11 = scmp.lt.u32.totalorder %s1559_s29, %s1555_s26  ;;  %p1563_p13 = scmp.lt.u32.totalorder %s1555_s26, %s1914_s11 }
 0x3b9   : > { %p1557_p7 = pnand %p1556_p6, %p1685_p4 }
 0x3ba   : > { %p1562_p12 = por %p1561_p11, %p1560_p10 }
 0x3bb   : > { %p1558_p9 = pneg %p1557_p7 }
 0x3bc   : > { %p1564_p0 = por %p1563_p13, %p1562_p12 }
 0x3be   : > { %p1565_p1 = pnand %p1564_p0, %p1558_p9 }
 0x3c0   : > { %1568 = shalt.err (!%p1565_p1)
}
 0x3c1   : > { %1450 = dma.vmem_to_hbm [thread:$0]  (%p1685_p4), %s1916_s8, 64, %s1914_s11, %s1274_s18  }
 0x3c2 PF: > { %p1456_p2 = scmp.ge.s32.totalorder %s1619_s17, 2  ;;  %s1302_s5 = sand.u32 1, %s1599_s12  }
 0x3c3   : > { %s1303_s6 = scalar_lea.sflag [#allocation3], %s1302_s5 }
 0x3c4   : > { %p1453_p3 = pnand %p1456_p2, %p1692_p8 }
 0x3c6   : > { %1594 = dma.done.wait (!%p1453_p3), %s1303_s6, 64  }
 0x3c7   : > { %1596 = vsyncadd (!%p1453_p3), %s1303_s6, 4294967232  ;;  %s16_s17 = sadd.s32 1, %s1619_s17   ;;  %s1970_s12 = smov %s1603_s13 }
 0x3c8   : > { %p13_p5 = scmp.ge.s32.totalorder %s16_s17, 4   ;;  %s1971_s13 = smov %s1607_s14 }
 0x3c9   : > { %s1972_s14 = smov %s1698_s25  ;;  %s1973_s15 = smov %s1615_s16 }
 0x3ca   : > { %s1974_s16 = smov %s1976_s20  ;;  %15 = sbr.rel (!%p13_p5) target bundleno = 4 (0x4), region = 67 }
 0x3d1   :  { %1308 = vsyncpa [#allocation3], 1 }
 0x3d2   :  { %1310 = vsyncpa [#allocation3 + $0x1], 1 }

</bundles_post_ra>
